<compile_context>
chip_gen: v5e
topology: v5e:2x2
jax: 0.10.0
libtpu: 0.0.40
codegen_flags: <defaults>
</compile_context>

<pallas_src>
import functools

import jax
import jax.numpy as jnp
from jax.experimental import pallas as pl
from jax.experimental.pallas import tpu as pltpu


def _round_up(x, m):
    return -(-x // m) * m


# ------------------------------ Pallas kernel --------------------------------
def _page_eviction_kernel(buf_ref, ctx_ref, wp_ref, wc_ref, v_ref, o_ref):
    """scores = tanh(buffers @ Wp + context @ Wc) @ v, for one batch tile."""
    tb, s, fp = buf_ref.shape
    h = wp_ref.shape[-1]
    mxu_dtype = wp_ref.dtype

    # Page linear on the MXU: (TB*S, Fp) @ (Fp, H), f32 accumulation.
    # S is padded to a multiple of 8 by the wrapper, so this reshape is a
    # layout-free collapse of the leading dims.
    buf2d = buf_ref[...].reshape(tb * s, fp).astype(mxu_dtype)
    buf_att = jnp.dot(buf2d, wp_ref[...],
                      preferred_element_type=jnp.float32).reshape(tb, s, h)

    # Context linear on the MXU: (TB, Fc) @ (Fc, H).
    ctx_att = jnp.dot(ctx_ref[...].astype(mxu_dtype), wc_ref[...],
                      preferred_element_type=jnp.float32)

    # Broadcast over buffer slots + tanh (EUP), all in f32.
    comb = jnp.tanh(buf_att + ctx_att[:, None, :])                 # (TB, S, H)

    # attention_v: contraction over H (small) as VPU multiply + lane reduce.
    scores = jnp.sum(comb * v_ref[...], axis=-1, keepdims=True)    # (TB, S, 1)
    o_ref[...] = scores.astype(o_ref.dtype)


# --------------------------------- wrapper ------------------------------------
@functools.partial(jax.jit, static_argnames=("block_b", "mxu_dtype"))
def page_eviction(params, buffers, context, *, block_b=128,
                  mxu_dtype=jnp.bfloat16):
    """buffers: [B, S, Fp] f32, context: [B, Fc] f32 -> scores [B, S] f32."""
    B, S, Fp = buffers.shape
    Bc, Fc = context.shape
    assert Bc == B
    H = params["wp_t"].shape[-1]

    # Pad buffer_size to a sublane multiple (8) so in-kernel 3D<->2D collapses
    # are layout no-ops, and batch to a multiple of the batch tile.
    S_pad = _round_up(S, 8)
    TB = min(block_b, _round_up(B, 8))
    B_pad = _round_up(B, TB)
    if (B_pad, S_pad) != (B, S):
        buffers = jnp.pad(buffers, ((0, B_pad - B), (0, S_pad - S), (0, 0)))
        context = jnp.pad(context, ((0, B_pad - B), (0, 0)))

    # Weights stored transposed vs. PyTorch nn.Linear.weight: [in, out].
    wp = params["wp_t"].astype(mxu_dtype)                 # (Fp, H)
    wc = params["wc_t"].astype(mxu_dtype)                 # (Fc, H)
    v3 = params["v"].reshape(1, 1, H).astype(jnp.float32)  # (1, 1, H)

    cost = pl.CostEstimate(
        flops=(2 * B_pad * S_pad * Fp * H
               + 2 * B_pad * Fc * H
               + 3 * B_pad * S_pad * H),
        transcendentals=B_pad * S_pad * H,
        bytes_accessed=(buffers.size * buffers.dtype.itemsize
                        + context.size * context.dtype.itemsize
                        + wp.size * wp.dtype.itemsize
                        + wc.size * wc.dtype.itemsize
                        + v3.size * 4
                        + B_pad * S_pad * 4),
    )

    out = pl.pallas_call(
        _page_eviction_kernel,
        out_shape=jax.ShapeDtypeStruct((B_pad, S_pad, 1), jnp.float32),
        grid=(B_pad // TB,),
        in_specs=[
            pl.BlockSpec((TB, S_pad, Fp), lambda i: (i, 0, 0)),   # batch-tiled
            pl.BlockSpec((TB, Fc), lambda i: (i, 0)),             # batch-tiled
            pl.BlockSpec((Fp, H), lambda i: (0, 0)),    # VMEM-resident weight
            pl.BlockSpec((Fc, H), lambda i: (0, 0)),    # VMEM-resident weight
            pl.BlockSpec((1, 1, H), lambda i: (0, 0, 0)),
        ],
        out_specs=pl.BlockSpec((TB, S_pad, 1), lambda i: (i, 0, 0)),
        compiler_params=pltpu.CompilerParams(
            dimension_semantics=("parallel",)),
        cost_estimate=cost,
    )(buffers, context, wp, wc, v3)

    return out[:B, :S, 0]


# ------------------------------ params / reference ----------------------------
def init_params(key, input_page_size, input_context_size, hidden_size):
    k1, k2, k3 = jax.random.split(key, 3)
    return {
        # nn.Linear(input_page_size, hidden, bias=False).weight.T
        "wp_t": jax.random.normal(k1, (input_page_size, hidden_size),
                                  jnp.float32) * 0.1,
        # nn.Linear(input_context_size, hidden, bias=False).weight.T
        "wc_t": jax.random.normal(k2, (input_context_size, hidden_size),
                                  jnp.float32) * 0.1,
        # nn.Linear(hidden, 1, bias=False).weight  (as a vector)
        "v": jax.random.normal(k3, (hidden_size,), jnp.float32) * 0.1,
    }


def page_eviction_ref(params, buffers, context, mxu_dtype=None):
    """Pure-JAX reference. mxu_dtype=None -> plain f32 PyTorch semantics;
    otherwise mimics the kernel's low-precision-operand / f32-accumulate path."""
    wp, wc, v = params["wp_t"], params["wc_t"], params["v"]
    if mxu_dtype is not None:
        buffers = buffers.astype(mxu_dtype)
        context = context.astype(mxu_dtype)
        wp = wp.astype(mxu_dtype)
        wc = wc.astype(mxu_dtype)
    buf_att = jnp.einsum("bsf,fh->bsh", buffers, wp,
                         preferred_element_type=jnp.float32)
    ctx_att = jnp.dot(context, wc, preferred_element_type=jnp.float32)
    comb = jnp.tanh(buf_att + ctx_att[:, None, :])
    return jnp.sum(comb * v.reshape(1, 1, -1).astype(jnp.float32), axis=-1)


# ----------------------------------- main --------------------------------------
if __name__ == "__main__":
    batch = 8
    buffer_size = 16
    input_page_size = 24
    input_context_size = 16
    hidden_size = 32

    key = jax.random.PRNGKey(0)
    kp, kb, kc = jax.random.split(key, 3)
    params = init_params(kp, input_page_size, input_context_size, hidden_size)

    buffers = jax.random.normal(kb, (batch, buffer_size, input_page_size),
                                jnp.float32)
    context = jax.random.normal(kc, (batch, input_context_size), jnp.float32)

    scores = page_eviction(params, buffers, context)
    scores = jax.block_until_ready(scores)
    assert scores.shape == (batch, buffer_size)

    # Tight check against a reference with identical bf16-operand / f32-accum numerics.
    ref_matched = page_eviction_ref(params, buffers, context,
                                    mxu_dtype=jnp.bfloat16)
    assert jnp.allclose(scores, ref_matched, atol=1e-4, rtol=1e-4), \
        "mismatch vs matched-precision reference"

    # Loose check against exact f32 PyTorch semantics (bf16 only on MXU operands).
    ref_f32 = page_eviction_ref(params, buffers, context, mxu_dtype=None)
    assert jnp.allclose(scores, ref_f32, atol=2e-2, rtol=2e-2), \
        "mismatch vs f32 reference"

    print("KERNEL_OK")
</pallas_src>

<mosaic_0001>
module attributes {stable_mosaic.version = 11 : i64} {
  func.func @_page_eviction_kernel(%arg0: i32, %arg1: memref<8x16x24xf32, #tpu.memory_space<vmem>>, %arg2: memref<8x16xf32, #tpu.memory_space<vmem>>, %arg3: memref<24x32xbf16, #tpu.memory_space<vmem>>, %arg4: memref<16x32xbf16, #tpu.memory_space<vmem>>, %arg5: memref<1x1x32xf32, #tpu.memory_space<vmem>>, %arg6: memref<8x16x1xf32, #tpu.memory_space<vmem>>) attributes {dimension_semantics = [#tpu.dimension_semantics<parallel>], iteration_bounds = array<i64: 1>, scalar_prefetch = 0 : i64, scratch_operands = 0 : i64, tpu.core_type = #tpu.core_type<tc>, window_params = [{transform_indices = @transform_0, window_bounds = array<i64: 8, 16, 24>}, {transform_indices = @transform_1, window_bounds = array<i64: 8, 16>}, {pipeline_mode = #tpu.pipeline_mode<synchronous>, transform_indices = @transform_2, window_bounds = array<i64: 24, 32>}, {pipeline_mode = #tpu.pipeline_mode<synchronous>, transform_indices = @transform_3, window_bounds = array<i64: 16, 32>}, {pipeline_mode = #tpu.pipeline_mode<synchronous>, transform_indices = @transform_4, window_bounds = array<i64: 1, 1, 32>}, {transform_indices = @transform_5, window_bounds = array<i64: 8, 16, 1>}]} {
    %c0 = arith.constant 0 : index
    %c0_0 = arith.constant 0 : index
    %c0_1 = arith.constant 0 : index
    %0 = vector.load %arg1[%c0, %c0_0, %c0_1] : memref<8x16x24xf32, #tpu.memory_space<vmem>>, vector<8x16x24xf32>
    %1 = vector.shape_cast %0 : vector<8x16x24xf32> to vector<128x24xf32>
    %2 = arith.truncf %1 : vector<128x24xf32> to vector<128x24xbf16>
    %c0_2 = arith.constant 0 : index
    %c0_3 = arith.constant 0 : index
    %3 = vector.load %arg3[%c0_2, %c0_3] : memref<24x32xbf16, #tpu.memory_space<vmem>>, vector<24x32xbf16>
    %cst = arith.constant dense<0.000000e+00> : vector<128x32xf32>
    %4 = tpu.matmul %2, %3, %cst {dimension_numbers = #tpu.dot_dimension_numbers<[1], [0], [0], [1], [0, 0, 1, 1], [], []>} : vector<128x24xbf16>, vector<24x32xbf16>, vector<128x32xf32> -> vector<128x32xf32>
    %5 = vector.shape_cast %4 : vector<128x32xf32> to vector<8x16x32xf32>
    %c0_4 = arith.constant 0 : index
    %c0_5 = arith.constant 0 : index
    %6 = vector.load %arg2[%c0_4, %c0_5] : memref<8x16xf32, #tpu.memory_space<vmem>>, vector<8x16xf32>
    %7 = arith.truncf %6 : vector<8x16xf32> to vector<8x16xbf16>
    %c0_6 = arith.constant 0 : index
    %c0_7 = arith.constant 0 : index
    %8 = vector.load %arg4[%c0_6, %c0_7] : memref<16x32xbf16, #tpu.memory_space<vmem>>, vector<16x32xbf16>
    %cst_8 = arith.constant dense<0.000000e+00> : vector<8x32xf32>
    %9 = tpu.matmul %7, %8, %cst_8 {dimension_numbers = #tpu.dot_dimension_numbers<[1], [0], [0], [1], [0, 0, 1, 1], [], []>} : vector<8x16xbf16>, vector<16x32xbf16>, vector<8x32xf32> -> vector<8x32xf32>
    %10 = vector.shape_cast %9 : vector<8x32xf32> to vector<8x1x32xf32>
    %11 = vector.broadcast %10 : vector<8x1x32xf32> to vector<8x16x32xf32>
    %12 = arith.addf %5, %11 : vector<8x16x32xf32>
    %13 = math.tanh %12 : vector<8x16x32xf32>
    %c0_9 = arith.constant 0 : index
    %c0_10 = arith.constant 0 : index
    %c0_11 = arith.constant 0 : index
    %14 = vector.load %arg5[%c0_9, %c0_10, %c0_11] : memref<1x1x32xf32, #tpu.memory_space<vmem>>, vector<1x1x32xf32>
    %15 = vector.broadcast %14 : vector<1x1x32xf32> to vector<8x16x32xf32>
    %16 = arith.mulf %13, %15 : vector<8x16x32xf32>
    %cst_12 = arith.constant dense<0.000000e+00> : vector<8x16xf32>
    %17 = vector.multi_reduction <add>, %16, %cst_12 [2] : vector<8x16x32xf32> to vector<8x16xf32>
    %18 = vector.shape_cast %17 : vector<8x16xf32> to vector<8x16x1xf32>
    %c0_13 = arith.constant 0 : index
    %c0_14 = arith.constant 0 : index
    %c0_15 = arith.constant 0 : index
    %19 = vector.load %arg6[%c0_13, %c0_14, %c0_15] : memref<8x16x1xf32, #tpu.memory_space<vmem>>, vector<8x16x1xf32>
    tpu.vector_store %arg6[%c0_13, %c0_14, %c0_15], %18 {strides = array<i32>} : memref<8x16x1xf32, #tpu.memory_space<vmem>>, vector<8x16x1xf32>,
    return
  }
  func.func @transform_0(%arg0: i32) -> (i32, i32, i32) {
    %c0_i32 = arith.constant 0 : i32
    %c0_i32_0 = arith.constant 0 : i32
    %c0_i32_1 = arith.constant 0 : i32
    return %arg0, %c0_i32, %c0_i32_0 : i32, i32, i32
  }
  func.func @transform_1(%arg0: i32) -> (i32, i32) {
    %c0_i32 = arith.constant 0 : i32
    %c0_i32_0 = arith.constant 0 : i32
    return %arg0, %c0_i32 : i32, i32
  }
  func.func @transform_2(%arg0: i32) -> (i32, i32) {
    %c0_i32 = arith.constant 0 : i32
    %c0_i32_0 = arith.constant 0 : i32
    %c0_i32_1 = arith.constant 0 : i32
    return %c0_i32, %c0_i32_0 : i32, i32
  }
  func.func @transform_3(%arg0: i32) -> (i32, i32) {
    %c0_i32 = arith.constant 0 : i32
    %c0_i32_0 = arith.constant 0 : i32
    %c0_i32_1 = arith.constant 0 : i32
    return %c0_i32, %c0_i32_0 : i32, i32
  }
  func.func @transform_4(%arg0: i32) -> (i32, i32, i32) {
    %c0_i32 = arith.constant 0 : i32
    %c0_i32_0 = arith.constant 0 : i32
    %c0_i32_1 = arith.constant 0 : i32
    %c0_i32_2 = arith.constant 0 : i32
    return %c0_i32, %c0_i32_0, %c0_i32_1 : i32, i32, i32
  }
  func.func @transform_5(%arg0: i32) -> (i32, i32, i32) {
    %c0_i32 = arith.constant 0 : i32
    %c0_i32_0 = arith.constant 0 : i32
    %c0_i32_1 = arith.constant 0 : i32
    return %arg0, %c0_i32, %c0_i32_0 : i32, i32, i32
  }
}

</mosaic_0001>

<bundles_post_ra>
// kernel: page_eviction.1
= control target key start
LH: loop header
LB: loop body
LE: loop exit
PB: predicated region body
PF: predicated region fallthrough
CT: control target
= control target key end

     0   :  { %10 = vsyncpa [#allocation3], 0  ;;  %s410_s21 = smov [#allocation2]   ;;  %s411_s23 = smov 128   ;;  %s584_s0 = inlined_call_operand.hbm [shape: f32[8,16,24], index: 0, kind: input, shape index: {}]   ;;  %s585_s1 = inlined_call_operand.vmem [shape: f32[8,16], index: 1, kind: input, shape index: {}]   ;;  %s586_s2 = inlined_call_operand.vmem [shape: bf16[24,32], index: 2, kind: input, shape index: {}]   ;;  %s587_s3 = inlined_call_operand.vmem [shape: bf16[16,32], index: 3, kind: input, shape index: {}]   ;;  %s588_s4 = inlined_call_operand.vmem [shape: f32[1,1,32], index: 4, kind: input, shape index: {}]   ;;  %s589_s5 = inlined_call_operand.vmem [shape: f32[8,16,1], index: 5, kind: output, shape index: {}]  }
   0x1   :  { %s15_s20 = sshll.u32 %s584_s0, 4  ;;  %s17_s22 = sshll.u32 %s410_s21, 4  ;;  %s16_s20 = int_to_ptr.hbm [resolvable:$true] %s15_s20  ;;  %s18_s22 = int_to_ptr.vmem [resolvable:$true] %s17_s22 }
   0x2   :  { %s412_s24 = smov 8  }
   0x3   :  { %23 = dma.hbm_to_vmem [thread:$0]  %s16_s20, 2048, %s18_s22, [#allocation3], %s411_s23, %s411_s23, %s412_s24  }
   0x4   :  { %408 = dma.done.wait [#allocation3], 2048  }
   0x5   :  { %409 = vsyncadd [#allocation3], 4294965248  ;;  %v63_v0 = vld [vmem:[%s586_s2 + $0x8] sm:$0xf]  ;;  %v343_v1 = vld [vmem:[%s587_s3] sm:$0xff]  ;;  %vm98_vm0 = vcmask 1043456  }
   0x6   :  { %v69_v2 = vunpack.c.l.b16 %v63_v0  ;;  %v151_v3 = vld [vmem:[%s585_s1] sm:$0xff]  ;;  %172 = vmatpush.bf16.msra.mxu1 %v343_v1  ;;  %vm161_vm1 = vcmask 130048   ;;  %v38_v9 = vld [vmem:[#allocation2 + $0x8] sm:$0xff]  ;;  %v43_v10 = vld [vmem:[#allocation2 + $0x30] sm:$0xff]  ;;  %vm73_vm2 = vcmask 195584   ;;  %vm254_vm3 = vcmask 261120  }
   0x7   :  { %v152_v4 = vpack.c.bf16 %v151_v3, %v151_v3  ;;  %v342_v7 = vld [vmem:[%s586_s2] sm:$0xff]  ;;  %v44_v11 = vld [vmem:[#allocation2 + $0x38] sm:$0xff]  ;;  %v50_v13 = vld [vmem:[#allocation2 + $0x68] sm:$0xff]  ;;  %vm303_vm4 = vcmask 7168  }
   0x8   :  { %v71_v5 = vpack.c.b16 %v69_v2, %v69_v2  ;;  %v37_v8 = vld [vmem:[#allocation2] sm:$0xff]  ;;  %v56_v15 = vpack.c.bf16 %v44_v11, %v43_v10  ;;  %v39_v17 = vld [vmem:[#allocation2 + $0x10] sm:$0xff]  ;;  %v40_v18 = vld [vmem:[#allocation2 + $0x18] sm:$0xff] }
   0x9   :  { %341 = vmatmul.msk.bf16.vlgmr.msra.gmra.mxu1 %vm161_vm1, %v152_v4  ;;  %v49_v12 = vld [vmem:[#allocation2 + $0x60] sm:$0xff]  ;;  %v53_v14 = vpack.c.bf16 %v38_v9, %v37_v8  ;;  %v46_v20 = vld [vmem:[#allocation2 + $0x48] sm:$0xff]  ;;  %v51_v21 = vld [vmem:[#allocation2 + $0x70] sm:$0xff]  ;;  %v54_v23 = vpack.c.bf16 %v40_v18, %v39_v17 }
   0xa   :  { %v100_v6 = vsel %vm98_vm0, %v71_v5, 0  ;;  %v59_v16 = vpack.c.bf16 %v50_v13, %v49_v12  ;;  %v45_v19 = vld [vmem:[#allocation2 + $0x40] sm:$0xff]  ;;  %v52_v22 = vld [vmem:[#allocation2 + $0x78] sm:$0xff]  ;;  %v42_v27 = vld [vmem:[#allocation2 + $0x28] sm:$0xff] }
   0xb   :  { %108 = vmatpush.bf16.msra.mxu0 %v100_v6  ;;  %344 = vmatpush.bf16.msra.mxu2 %v100_v6  ;;  %v57_v24 = vpack.c.bf16 %v46_v20, %v45_v19  ;;  %v60_v25 = vpack.c.bf16 %v52_v22, %v51_v21  ;;  %v41_v26 = vld [vmem:[#allocation2 + $0x20] sm:$0xff]  ;;  %v47_v28 = vld [vmem:[#allocation2 + $0x50] sm:$0xff]  ;;  %v48_v29 = vld [vmem:[#allocation2 + $0x58] sm:$0xff] }
   0xc   :  { %345 = vmatpush.bf16.msra.mxu3 %v100_v6  ;;  %v55_v30 = vpack.c.bf16 %v42_v27, %v41_v26  ;;  %v58_v31 = vpack.c.bf16 %v48_v29, %v47_v28  ;;  %v476_v42 = vld [vmem:[%s588_s4] ss:$0 sm:$0xff] }
   0xf   :  { %109 = vmatpush.bf16.msra.mxu0 %v342_v7  ;;  %346 = vmatpush.bf16.msra.mxu2 %v342_v7 }
  0x10   :  { %347 = vmatpush.bf16.msra.mxu3 %v342_v7 }
  0x12   :  { %329 = vmatmul.msk.bf16.vlgmr.msra.gmra.mxu0 %vm73_vm2, %v53_v14  ;;  %332 = vmatmul.msk.bf16.vlgmr.msra.gmra.mxu2 %vm73_vm2, %v56_v15 }
  0x13   :  { %335 = vmatmul.msk.bf16.vlgmr.msra.gmra.mxu3 %vm73_vm2, %v59_v16 }
  0x22   :  { %330 = vmatmul.msk.bf16.gmra.mxu0 %vm73_vm2, %v54_v23  ;;  %333 = vmatmul.msk.bf16.gmra.mxu2 %vm73_vm2, %v57_v24 }
  0x23   :  { %336 = vmatmul.msk.bf16.gmra.mxu3 %vm73_vm2, %v60_v25 }
  0x32   :  { %331 = vmatmul.msk.bf16.gmra.mxu0 %vm73_vm2, %v55_v30  ;;  %334 = vmatmul.msk.bf16.gmra.mxu2 %vm73_vm2, %v58_v31 }
  0x86   :  { %v466_v32 = vpop.f32.mrf.mxu1 }
  0x87   :  { %v186_v33 = vperm.slane %v466_v32, 0  ;;  %v181_v34 = vrot.slane %v466_v32, 3  ;;  %v184_v38 = vrot.slane %v466_v32, 6  ;;  %v179_v48 = vrot.slane %v466_v32, 1 }
  0x88   :  { %v182_v59 = vrot.slane %v466_v32, 4  ;;  %v180_v11 = vrot.slane %v466_v32, 2  ;;  %v185_v13 = vrot.slane %v466_v32, 7  ;;  %v183_v25 = vrot.slane %v466_v32, 5 }
  0x89   :  { %v189_v39 = vperm.slane %v181_v34, 0  ;;  %v471_v40 = vperm.slane %v184_v38, 0  ;;  %v187_v51 = vperm.slane %v179_v48, 0 }
  0x8a   :  { %v190_v63 = vperm.slane %v182_v59, 0  ;;  %v188_v18 = vperm.slane %v180_v11, 0  ;;  %v193_v23 = vperm.slane %v185_v13, 0  ;;  %v191_v31 = vperm.slane %v183_v25, 0 }
  0x8e   :  { %v176_v36 = vpop.f32.mrf.mxu1 }
  0x8f   :  { %v111_v35 = vpop.f32.mrf.mxu0 }
  0x90   :  { %v202_v37 = vadd.f32 %v186_v33, %v111_v35 }
  0x92   :  { %352 = vtanh.f32 %v202_v37 }
  0x95   :  { %v126_v41 = vpop.f32.mrf.mxu2 }
  0x96   :  { %v208_v43 = vadd.f32 %v189_v39, %v126_v41  ;;  %v141_v44 = vpop.f32.mrf.mxu3 }
  0x97   :  { %v113_v45 = vpop.f32.mrf.mxu0  ;;  %v214_v47 = vadd.f32 %v471_v40, %v141_v44 }
  0x98   :  { %v353_v46 = vpop.eup %352  ;;  %354 = vtanh.f32 %v208_v43  ;;  %v203_v62 = vadd.f32 %v186_v33, %v113_v45 }
  0x99   :  { %v238_v49 = vmul.f32 %v353_v46, %v476_v42  ;;  %356 = vtanh.f32 %v214_v47 }
  0x9b   :  { %v255_v50 = vsel %vm254_vm3, %v238_v49, 0.0 }
  0x9c   :  { %256 = vadd.xlane.f32.xlu0 %v255_v50 }
  0x9d   :  { %v128_v52 = vpop.f32.mrf.mxu2 }
  0x9e   :  { %v355_v53 = vpop.eup %354  ;;  %v209_v54 = vadd.f32 %v189_v39, %v128_v52  ;;  %v143_v55 = vpop.f32.mrf.mxu3 }
  0x9f   :  { %v116_v56 = vpop.f32.mrf.mxu0  ;;  %v244_v57 = vmul.f32 %v355_v53, %v476_v42  ;;  %v357_v61 = vpop.eup %356  ;;  %v215_v39 = vadd.f32 %v471_v40, %v143_v55 }
  0xa0   :  { %358 = vtanh.f32 %v209_v54  ;;  %v204_v58 = vadd.f32 %v187_v51, %v116_v56  ;;  %v250_v1 = vmul.f32 %v357_v61, %v476_v42 }
  0xa1   :  { %v273_v60 = vsel %vm254_vm3, %v244_v57, 0.0 }
  0xa2   :  { %360 = vtanh.f32 %v204_v58  ;;  %v291_v9 = vsel %vm254_vm3, %v250_v1, 0.0 }
  0xa3   :  { %362 = vtanh.f32 %v203_v62 }
  0xa4   :  { %274 = vadd.xlane.f32.xlu0 %v273_v60 }
  0xa5   :  { %v131_v0 = vpop.f32.mrf.mxu2 }
  0xa6   :  { %v359_v2 = vpop.eup %358  ;;  %v210_v3 = vadd.f32 %v190_v63, %v131_v0  ;;  %v486_v4 = vpop.f32.mrf.mxu3 }
  0xa7   :  { %v118_v5 = vpop.f32.mrf.mxu0  ;;  %v245_v6 = vmul.f32 %v359_v2, %v476_v42  ;;  %v216_v56 = vadd.f32 %v193_v23, %v486_v4 }
  0xa8   :  { %364 = vtanh.f32 %v210_v3  ;;  %v205_v7 = vadd.f32 %v187_v51, %v118_v5  ;;  %v361_v10 = vpop.eup %360 }
  0xa9   :  { %v276_v8 = vsel %vm254_vm3, %v245_v6, 0.0  ;;  %v363_v12 = vpop.eup %362  ;;  %v240_v15 = vmul.f32 %v361_v10, %v476_v42 }
  0xaa   :  { %277 = vadd.xlane.f32.xlu1 %v276_v8  ;;  %366 = vtanh.f32 %v205_v7  ;;  %v239_v22 = vmul.f32 %v363_v12, %v476_v42 }
  0xab   :  { %v261_v27 = vsel %vm254_vm3, %v240_v15, 0.0 }
  0xac   :  { %292 = vadd.xlane.f32.xlu0 %v291_v9  ;;  %v258_v30 = vsel %vm254_vm3, %v239_v22, 0.0 }
  0xad   :  { %v133_v14 = vpop.f32.mrf.mxu2 }
  0xae   :  { %v365_v16 = vpop.eup %364  ;;  %v211_v17 = vadd.f32 %v190_v63, %v133_v14  ;;  %v148_v19 = vpop.f32.mrf.mxu3 }
  0xaf   :  { %v121_v20 = vpop.f32.mrf.mxu0  ;;  %v246_v21 = vmul.f32 %v365_v16, %v476_v42  ;;  %v217_v29 = vadd.f32 %v193_v23, %v148_v19 }
  0xb0   :  { %368 = vtanh.f32 %v211_v17  ;;  %v206_v24 = vadd.f32 %v188_v18, %v121_v20  ;;  %v367_v28 = vpop.eup %366 }
  0xb1   :  { %v279_v26 = vsel %vm254_vm3, %v246_v21, 0.0  ;;  %v241_v34 = vmul.f32 %v367_v28, %v476_v42 }
  0xb2   :  { %370 = vtanh.f32 %v206_v24  ;;  %280 = vadd.xlane.f32.xlu2 %v279_v26  ;;  %262 = vadd.xlane.f32.xlu1 %v261_v27 }
  0xb3   :  { %372 = vtanh.f32 %v217_v29  ;;  %v264_v43 = vsel %vm254_vm3, %v241_v34, 0.0 }
  0xb4   :  { %259 = vadd.xlane.f32.xlu0 %v258_v30 }
  0xb5   :  { %v136_v33 = vpop.f32.mrf.mxu2 }
  0xb6   :  { %v369_v35 = vpop.eup %368  ;;  %v212_v36 = vadd.f32 %v191_v31, %v136_v33 }
  0xb7   :  { %v123_v32 = vpop.f32.mrf.mxu0  ;;  %v247_v37 = vmul.f32 %v369_v35, %v476_v42 }
  0xb8   :  { %v371_v38 = vpop.eup %370  ;;  %374 = vtanh.f32 %v212_v36  ;;  %v207_v41 = vadd.f32 %v188_v18, %v123_v32 }
  0xb9   :  { %v242_v44 = vmul.f32 %v371_v38, %v476_v42  ;;  %v282_v45 = vsel %vm254_vm3, %v247_v37, 0.0  ;;  %v373_v47 = vpop.eup %372 }
  0xba   :  { %376 = vtanh.f32 %v207_v41  ;;  %265 = vadd.xlane.f32.xlu1 %v264_v43  ;;  %v253_v51 = vmul.f32 %v373_v47, %v476_v42 }
  0xbb   :  { %v267_v46 = vsel %vm254_vm3, %v242_v44, 0.0  ;;  %378 = vtanh.f32 %v215_v39 }
  0xbc   :  { %283 = vadd.xlane.f32.xlu0 %v282_v45  ;;  %268 = vadd.xlane.f32.xlu2 %v267_v46  ;;  %v300_v57 = vsel %vm254_vm3, %v253_v51, 0.0 }
  0xbd   :  { %v138_v48 = vpop.f32.mrf.mxu2 }
  0xbe   :  { %v375_v49 = vpop.eup %374  ;;  %v213_v50 = vadd.f32 %v191_v31, %v138_v48 }
  0xbf   :  { %v248_v40 = vmul.f32 %v375_v49, %v476_v42 }
  0xc0   :  { %v377_v52 = vpop.eup %376  ;;  %380 = vtanh.f32 %v213_v50 }
  0xc1   :  { %v285_v53 = vsel %vm254_vm3, %v248_v40, 0.0  ;;  %v243_v54 = vmul.f32 %v377_v52, %v476_v42  ;;  %v379_v55 = vpop.eup %378  ;;  %382 = vtanh.f32 %v216_v56 }
  0xc2   :  { %286 = vadd.xlane.f32.xlu1 %v285_v53  ;;  %v251_v59 = vmul.f32 %v379_v55, %v476_v42 }
  0xc3   :  { %v270_v58 = vsel %vm254_vm3, %v243_v54, 0.0 }
  0xc4   :  { %301 = vadd.xlane.f32.xlu0 %v300_v57  ;;  %271 = vadd.xlane.f32.xlu2 %v270_v58  ;;  %v294_v62 = vsel %vm254_vm3, %v251_v59, 0.0 }
  0xc6   :  { %v381_v60 = vpop.eup %380 }
  0xc7   :  { %v249_v61 = vmul.f32 %v381_v60, %v476_v42  ;;  %v383_v0 = vpop.eup %382 }
  0xc8   :  { %v252_v1 = vmul.f32 %v383_v0, %v476_v42 }
  0xc9   :  { %v288_v63 = vsel %vm254_vm3, %v249_v61, 0.0 }
  0xca   :  { %295 = vadd.xlane.f32.xlu1 %v294_v62  ;;  %v297_v2 = vsel %vm254_vm3, %v252_v1, 0.0 }
  0xcc   :  { %289 = vadd.xlane.f32.xlu2 %v288_v63 }
  0xd4   :  { %298 = vadd.xlane.f32.xlu2 %v297_v2 }
 0x10f   :  { %v257_v3 = vpop.xlane.xlu0 %256 }
 0x110   :  { %304 = vst.msk [vmem:[%s589_s5] sm:$0xff] %vm303_vm4, %v257_v3 }
 0x117   :  { %v275_v4 = vpop.xlane.xlu0 %274 }
 0x118   :  { %310 = vst.msk [vmem:[%s589_s5 + $0x30] sm:$0xff] %vm303_vm4, %v275_v4 }
 0x11d   :  { %v278_v5 = vpop.xlane.xlu1 %277 }
 0x11e   :  { %311 = vst.msk [vmem:[%s589_s5 + $0x38] sm:$0xff] %vm303_vm4, %v278_v5 }
 0x11f   :  { %v293_v42 = vpop.xlane.xlu0 %292 }
 0x120   :  { %316 = vst.msk [vmem:[%s589_s5 + $0x60] sm:$0xff] %vm303_vm4, %v293_v42 }
 0x125   :  { %v281_v6 = vpop.xlane.xlu2 %280  ;;  %v263_v7 = vpop.xlane.xlu1 %262 }
 0x126   :  { %312 = vst.msk [vmem:[%s589_s5 + $0x40] sm:$0xff] %vm303_vm4, %v281_v6 }
 0x127   :  { %306 = vst.msk [vmem:[%s589_s5 + $0x10] sm:$0xff] %vm303_vm4, %v263_v7  ;;  %v260_v8 = vpop.xlane.xlu0 %259 }
 0x128   :  { %305 = vst.msk [vmem:[%s589_s5 + $0x8] sm:$0xff] %vm303_vm4, %v260_v8 }
 0x12d   :  { %v266_v9 = vpop.xlane.xlu1 %265 }
 0x12e   :  { %307 = vst.msk [vmem:[%s589_s5 + $0x18] sm:$0xff] %vm303_vm4, %v266_v9 }
 0x12f   :  { %v284_v10 = vpop.xlane.xlu0 %283  ;;  %v269_v11 = vpop.xlane.xlu2 %268 }
 0x130   :  { %313 = vst.msk [vmem:[%s589_s5 + $0x48] sm:$0xff] %vm303_vm4, %v284_v10 }
 0x131   :  { %308 = vst.msk [vmem:[%s589_s5 + $0x20] sm:$0xff] %vm303_vm4, %v269_v11 }
 0x135   :  { %v287_v12 = vpop.xlane.xlu1 %286 }
 0x136   :  { %314 = vst.msk [vmem:[%s589_s5 + $0x50] sm:$0xff] %vm303_vm4, %v287_v12 }
 0x137   :  { %v302_v13 = vpop.xlane.xlu0 %301  ;;  %v272_v14 = vpop.xlane.xlu2 %271 }
 0x138   :  { %319 = vst.msk [vmem:[%s589_s5 + $0x78] sm:$0xff] %vm303_vm4, %v302_v13 }
 0x139   :  { %309 = vst.msk [vmem:[%s589_s5 + $0x28] sm:$0xff] %vm303_vm4, %v272_v14 }
 0x13d   :  { %v296_v15 = vpop.xlane.xlu1 %295 }
 0x13e   :  { %317 = vst.msk [vmem:[%s589_s5 + $0x68] sm:$0xff] %vm303_vm4, %v296_v15 }
 0x13f   :  { %v290_v16 = vpop.xlane.xlu2 %289 }
 0x140   :  { %315 = vst.msk [vmem:[%s589_s5 + $0x58] sm:$0xff] %vm303_vm4, %v290_v16 }
 0x147   :  { %v299_v17 = vpop.xlane.xlu2 %298 }
 0x148   :  { %318 = vst.msk [vmem:[%s589_s5 + $0x70] sm:$0xff] %vm303_vm4, %v299_v17 }
 0x149   :  { %324 = vsyncpa [#allocation3], 1 }

</bundles_post_ra>
